<compile_context>
chip_gen: v7x
topology: tpu7x:2x2x1
jax: 0.10.0
libtpu: 0.0.40
codegen_flags: <defaults>
</compile_context>

<pallas_src>
import math

import jax
import jax.numpy as jnp
from jax.experimental import pallas as pl
from jax.experimental.pallas import tpu as pltpu

# ---- module hyper-parameters (from the PyTorch file) ------------------------
D_MODEL = 3
NUM_HEADS = 1            # head_dim == d_model
MAX_SEQ = 10
FFN_HIDDEN = 16
NUM_LAYERS = 12
MID1 = 32                # mid_output_dtw_1
MID2 = 16                # mid_output_dtw_2
FINAL_OUT = 8            # final_output_dtw
INPUT_DIM = MAX_SEQ * D_MODEL   # torch.flatten of (10, 3) -> 30
EPS = 1e-5

# ---- packed small-vector layout (one (1, VEC_TOTAL) VMEM ref instead of 13 refs) ----
_VEC_SEGMENTS = (
    ("bqkv", 3 * D_MODEL), ("bo", D_MODEL), ("g1", D_MODEL), ("b1", D_MODEL),
    ("b1f", FFN_HIDDEN), ("b2f", D_MODEL), ("g2", D_MODEL), ("b2", D_MODEL),
    ("lng", D_MODEL), ("lnb", D_MODEL),
    ("bc1", MID1), ("bc2", MID2), ("bc3", FINAL_OUT),
)
VEC_OFFSETS = {}
_off = 0
for _name, _n in _VEC_SEGMENTS:
    VEC_OFFSETS[_name] = (_off, _n)
    _off += _n
VEC_TOTAL = _off  # = 105, fits in a single (8,128) VMEM tile


# ---- in-kernel helpers -------------------------------------------------------
def _layernorm(x, gamma, beta):
    # matches both the custom LayerNormalization and nn.LayerNorm (biased var, eps=1e-5)
    mean = jnp.mean(x, axis=-1, keepdims=True)
    var = jnp.mean((x - mean) ** 2, axis=-1, keepdims=True)
    return gamma * ((x - mean) * jax.lax.rsqrt(var + EPS)) + beta


def _softmax_last(x, approx):
    x = x - jnp.max(x, axis=-1, keepdims=True)
    e = jnp.exp(x)
    s = jnp.sum(e, axis=-1, keepdims=True)
    if approx:
        return e * pl.reciprocal(s, approx=True)   # EUP slot, internal softmax only
    return e / s                                   # exact for the model output


# ---- the single fused kernel -------------------------------------------------
def music1_kernel(x_ref, pos_ref, wqkv_ref, wo_ref, w1f_ref, w2f_ref,
                  wc1_ref, wc2_ref, wc3_ref, vec_ref, out_ref):
    vec = vec_ref[...]                                   # (1, VEC_TOTAL) packed vectors

    def seg(name):
        o, n = VEC_OFFSETS[name]
        return vec[:, o:o + n]

    # ---- EncoderLayer (only the last one matters; see header note) ----------
    h = x_ref[...] + pos_ref[...]                                            # (S, D)

    qkv = jnp.dot(h, wqkv_ref[...], preferred_element_type=jnp.float32) + seg("bqkv")
    q = qkv[:, 0:D_MODEL]
    k = qkv[:, D_MODEL:2 * D_MODEL]
    v = qkv[:, 2 * D_MODEL:3 * D_MODEL]

    # scaled dot-product attention, num_heads == 1, mask is None
    scores = jax.lax.dot_general(q, k, (((1,), (1,)), ((), ())),
                                 preferred_element_type=jnp.float32)
    scores = scores * (1.0 / math.sqrt(D_MODEL))
    attn = _softmax_last(scores, approx=True)                                # (S, S)
    vals = jnp.dot(attn, v, preferred_element_type=jnp.float32)              # (S, D)
    mha = jnp.dot(vals, wo_ref[...], preferred_element_type=jnp.float32) + seg("bo")

    # dropout (layer_drop_1) is identity in inference mode
    y1 = _layernorm(h + mha, seg("g1"), seg("b1"))                           # residual w/ (x+pos)

    ff = jnp.dot(y1, w1f_ref[...], preferred_element_type=jnp.float32) + seg("b1f")
    ff = jnp.maximum(ff, 0.0)
    ff = jnp.dot(ff, w2f_ref[...], preferred_element_type=jnp.float32) + seg("b2f")

    y2 = _layernorm(ff + y1, seg("g2"), seg("b2"))                           # encoder output

    # ---- MUSIC1 head: nn.LayerNorm(d_model) ---------------------------------
    z = _layernorm(y2, seg("lng"), seg("lnb"))                               # (S, D)

    # ---- torch.flatten + Combiner.linear1 (no (S,D)->(1,S*D) relayout) ------
    # wc1_ref is (S, D*MID1) with wc1_2d[s, d*MID1 + o] == wc1[s*D + d, o]
    # G[d, m] = sum_s z[s, d] * wc1_2d[s, m];  h1[o] = sum_d G[d, d*MID1 + o]
    g = jax.lax.dot_general(z, wc1_ref[...], (((0,), (0,)), ((), ())),
                            preferred_element_type=jnp.float32)              # (D, D*MID1)
    h1 = seg("bc1")
    for d in range(D_MODEL):
        h1 = h1 + g[d:d + 1, d * MID1:(d + 1) * MID1]                        # (1, MID1)
    h1 = jnp.maximum(h1, 0.0)

    h2 = jnp.dot(h1, wc2_ref[...], preferred_element_type=jnp.float32) + seg("bc2")
    h2 = jnp.maximum(h2, 0.0)
    # combiner dropout is identity in inference mode
    logits = jnp.dot(h2, wc3_ref[...], preferred_element_type=jnp.float32) + seg("bc3")
    out_ref[...] = _softmax_last(logits, approx=False)                       # (1, FINAL_OUT)


# ---- jitted wrapper: one pallas_call for the whole forward -------------------
_VMEM = pl.BlockSpec(memory_space=pltpu.MemorySpace.VMEM)


@jax.jit
def music1_forward(x, fp):
    out = pl.pallas_call(
        music1_kernel,
        out_shape=jax.ShapeDtypeStruct((1, FINAL_OUT), jnp.float32),
        in_specs=[_VMEM] * 10,
        out_specs=_VMEM,
    )(x, fp["pos"], fp["wqkv"], fp["wo"], fp["w1f"], fp["w2f"],
      fp["wc1"], fp["wc2"], fp["wc3"], fp["vec"])
    return out.reshape(FINAL_OUT)


# ---- parameters & positional encoding (plain-JAX setup glue) -----------------
def positional_encoding():
    # reference PE stacks only even_PE => sin(position / denom) on every dim
    i = jnp.arange(D_MODEL, dtype=jnp.float32)
    denom = jnp.power(10000.0, i / D_MODEL)
    position = jnp.arange(MAX_SEQ, dtype=jnp.float32)[:, None]
    return jnp.sin(position / denom)                                 # (10, 3)


def make_params(key):
    kit = iter(jax.random.split(key, 128))

    def lin(fan_in, fan_out):
        bound = 1.0 / math.sqrt(fan_in)
        w = jax.random.uniform(next(kit), (fan_in, fan_out), jnp.float32, -bound, bound)
        b = jax.random.uniform(next(kit), (1, fan_out), jnp.float32, -bound, bound)
        return w, b

    layers = []
    for _ in range(NUM_LAYERS):
        wqkv, bqkv = lin(D_MODEL, 3 * D_MODEL)        # kept fused (qkv_layer)
        wo, bo = lin(D_MODEL, D_MODEL)
        w1f, b1f = lin(D_MODEL, FFN_HIDDEN)
        w2f, b2f = lin(FFN_HIDDEN, D_MODEL)
        layers.append(dict(
            wqkv=wqkv, bqkv=bqkv, wo=wo, bo=bo,
            g1=jnp.ones((1, D_MODEL), jnp.float32), b1=jnp.zeros((1, D_MODEL), jnp.float32),
            w1f=w1f, b1f=b1f, w2f=w2f, b2f=b2f,
            g2=jnp.ones((1, D_MODEL), jnp.float32), b2=jnp.zeros((1, D_MODEL), jnp.float32),
        ))

    wc1, bc1 = lin(INPUT_DIM, MID1)
    wc2, bc2 = lin(MID1, MID2)
    wc3, bc3 = lin(MID2, FINAL_OUT)
    return dict(
        layers=layers, pos=positional_encoding(),
        ln_gamma=jnp.ones((1, D_MODEL), jnp.float32),
        ln_beta=jnp.zeros((1, D_MODEL), jnp.float32),
        wc1=wc1, bc1=bc1, wc2=wc2, bc2=bc2, wc3=wc3, bc3=bc3,
    )


def fuse_params(params):
    """Select exactly what the forward uses (last encoder layer + head) and pack
    all the tiny (1, N) vectors into one concatenated array for a single DMA."""
    lp = params["layers"][-1]   # only the last layer's output reaches the head
    pieces = dict(
        bqkv=lp["bqkv"], bo=lp["bo"], g1=lp["g1"], b1=lp["b1"],
        b1f=lp["b1f"], b2f=lp["b2f"], g2=lp["g2"], b2=lp["b2"],
        lng=params["ln_gamma"], lnb=params["ln_beta"],
        bc1=params["bc1"], bc2=params["bc2"], bc3=params["bc3"])
    vec = jnp.concatenate([pieces[name] for name, _ in _VEC_SEGMENTS], axis=1)
    assert vec.shape == (1, VEC_TOTAL)
    return dict(
        pos=params["pos"], wqkv=lp["wqkv"], wo=lp["wo"],
        w1f=lp["w1f"], w2f=lp["w2f"],
        # (30, 32) -> (10, 96), row-major: wc1_2d[s, d*32+o] == wc1[s*3+d, o]
        # (matches torch.flatten order of the (10, 3) LayerNorm output)
        wc1=params["wc1"].reshape(MAX_SEQ, D_MODEL * MID1),
        wc2=params["wc2"], wc3=params["wc3"], vec=vec)


if __name__ == "__main__":
    key = jax.random.PRNGKey(0)
    k_params, k_x = jax.random.split(key)
    params = make_params(k_params)
    fused = fuse_params(params)

    # MUSIC1 input: (max_sequence_length, d_model) = (10, 3), float32
    x = jax.random.normal(k_x, (MAX_SEQ, D_MODEL), jnp.float32)

    out = music1_forward(x, fused)
    out = jax.block_until_ready(out)

    assert out.shape == (FINAL_OUT,)
    assert bool(jnp.isfinite(out).all())
    assert abs(float(jnp.sum(out)) - 1.0) < 1e-4   # softmax output sums to 1
    print("KERNEL_OK")
</pallas_src>

<mosaic_0001>
module attributes {stable_mosaic.version = 11 : i64} {
  func.func @music1_kernel(%arg0: memref<10x3xf32, #tpu.memory_space<vmem>>, %arg1: memref<10x3xf32, #tpu.memory_space<vmem>>, %arg2: memref<3x9xf32, #tpu.memory_space<vmem>>, %arg3: memref<3x3xf32, #tpu.memory_space<vmem>>, %arg4: memref<3x16xf32, #tpu.memory_space<vmem>>, %arg5: memref<16x3xf32, #tpu.memory_space<vmem>>, %arg6: memref<10x96xf32, #tpu.memory_space<vmem>>, %arg7: memref<32x16xf32, #tpu.memory_space<vmem>>, %arg8: memref<16x8xf32, #tpu.memory_space<vmem>>, %arg9: memref<1x105xf32, #tpu.memory_space<vmem>>, %arg10: memref<1x8xf32, #tpu.memory_space<vmem>>) attributes {dimension_semantics = [], scalar_prefetch = 0 : i64, scratch_operands = 0 : i64, tpu.core_type = #tpu.core_type<tc>} {
    %c0 = arith.constant 0 : index
    %c0_0 = arith.constant 0 : index
    %0 = vector.load %arg9[%c0, %c0_0] : memref<1x105xf32, #tpu.memory_space<vmem>>, vector<1x105xf32>
    %c0_1 = arith.constant 0 : index
    %c0_2 = arith.constant 0 : index
    %1 = vector.load %arg0[%c0_1, %c0_2] : memref<10x3xf32, #tpu.memory_space<vmem>>, vector<10x3xf32>
    %c0_3 = arith.constant 0 : index
    %c0_4 = arith.constant 0 : index
    %2 = vector.load %arg1[%c0_3, %c0_4] : memref<10x3xf32, #tpu.memory_space<vmem>>, vector<10x3xf32>
    %3 = arith.addf %1, %2 : vector<10x3xf32>
    %c0_5 = arith.constant 0 : index
    %c0_6 = arith.constant 0 : index
    %4 = vector.load %arg2[%c0_5, %c0_6] : memref<3x9xf32, #tpu.memory_space<vmem>>, vector<3x9xf32>
    %cst = arith.constant dense<0.000000e+00> : vector<10x9xf32>
    %5 = tpu.matmul %3, %4, %cst {dimension_numbers = #tpu.dot_dimension_numbers<[1], [0], [0], [1], [0, 0, 1, 1], [], []>} : vector<10x3xf32>, vector<3x9xf32>, vector<10x9xf32> -> vector<10x9xf32>
    %6 = vector.extract_strided_slice %0 {offsets = [0, 0], sizes = [1, 9], strides = [1, 1]} : vector<1x105xf32> to vector<1x9xf32>
    %7 = vector.broadcast %6 : vector<1x9xf32> to vector<10x9xf32>
    %8 = arith.addf %5, %7 : vector<10x9xf32>
    %9 = vector.extract_strided_slice %8 {offsets = [0, 0], sizes = [10, 3], strides = [1, 1]} : vector<10x9xf32> to vector<10x3xf32>
    %10 = vector.extract_strided_slice %8 {offsets = [0, 3], sizes = [10, 3], strides = [1, 1]} : vector<10x9xf32> to vector<10x3xf32>
    %11 = vector.extract_strided_slice %8 {offsets = [0, 6], sizes = [10, 3], strides = [1, 1]} : vector<10x9xf32> to vector<10x3xf32>
    %cst_7 = arith.constant dense<0.000000e+00> : vector<10x10xf32>
    %12 = tpu.matmul %9, %10, %cst_7 {dimension_numbers = #tpu.dot_dimension_numbers<[1], [1], [0], [0], [0, 0, 1, 0], [], []>} : vector<10x3xf32>, vector<10x3xf32>, vector<10x10xf32> -> vector<10x10xf32>
    %cst_8 = arith.constant 0.577350259 : f32
    %13 = vector.broadcast %cst_8 : f32 to vector<10x10xf32>
    %14 = arith.mulf %12, %13 : vector<10x10xf32>
    %cst_9 = arith.constant dense<0xFF800000> : vector<10xf32>
    %15 = vector.multi_reduction <maximumf>, %14, %cst_9 [1] : vector<10x10xf32> to vector<10xf32>
    %16 = vector.shape_cast %15 : vector<10xf32> to vector<10x1xf32>
    %17 = vector.broadcast %16 : vector<10x1xf32> to vector<10x10xf32>
    %18 = arith.subf %14, %17 : vector<10x10xf32>
    %19 = math.exp %18 : vector<10x10xf32>
    %cst_10 = arith.constant dense<0.000000e+00> : vector<10xf32>
    %20 = vector.multi_reduction <add>, %19, %cst_10 [1] : vector<10x10xf32> to vector<10xf32>
    %21 = vector.shape_cast %20 : vector<10xf32> to vector<10x1xf32>
    %22 = tpu.reciprocal %21 {approx = true} : vector<10x1xf32> -> vector<10x1xf32>
    %23 = vector.broadcast %22 : vector<10x1xf32> to vector<10x10xf32>
    %24 = arith.mulf %19, %23 : vector<10x10xf32>
    %cst_11 = arith.constant dense<0.000000e+00> : vector<10x3xf32>
    %25 = tpu.matmul %24, %11, %cst_11 {dimension_numbers = #tpu.dot_dimension_numbers<[1], [0], [0], [1], [0, 0, 1, 1], [], []>} : vector<10x10xf32>, vector<10x3xf32>, vector<10x3xf32> -> vector<10x3xf32>
    %c0_12 = arith.constant 0 : index
    %c0_13 = arith.constant 0 : index
    %26 = vector.load %arg3[%c0_12, %c0_13] : memref<3x3xf32, #tpu.memory_space<vmem>>, vector<3x3xf32>
    %cst_14 = arith.constant dense<0.000000e+00> : vector<10x3xf32>
    %27 = tpu.matmul %25, %26, %cst_14 {dimension_numbers = #tpu.dot_dimension_numbers<[1], [0], [0], [1], [0, 0, 1, 1], [], []>} : vector<10x3xf32>, vector<3x3xf32>, vector<10x3xf32> -> vector<10x3xf32>
    %28 = vector.extract_strided_slice %0 {offsets = [0, 9], sizes = [1, 3], strides = [1, 1]} : vector<1x105xf32> to vector<1x3xf32>
    %29 = vector.broadcast %28 : vector<1x3xf32> to vector<10x3xf32>
    %30 = arith.addf %27, %29 : vector<10x3xf32>
    %31 = arith.addf %3, %30 : vector<10x3xf32>
    %32 = vector.extract_strided_slice %0 {offsets = [0, 12], sizes = [1, 3], strides = [1, 1]} : vector<1x105xf32> to vector<1x3xf32>
    %33 = vector.extract_strided_slice %0 {offsets = [0, 15], sizes = [1, 3], strides = [1, 1]} : vector<1x105xf32> to vector<1x3xf32>
    %cst_15 = arith.constant dense<0.000000e+00> : vector<10xf32>
    %34 = vector.multi_reduction <add>, %31, %cst_15 [1] : vector<10x3xf32> to vector<10xf32>
    %35 = vector.shape_cast %34 : vector<10xf32> to vector<10x1xf32>
    %cst_16 = arith.constant 3.000000e+00 : f32
    %36 = vector.broadcast %cst_16 : f32 to vector<10x1xf32>
    %37 = arith.divf %35, %36 : vector<10x1xf32>
    %38 = vector.broadcast %37 : vector<10x1xf32> to vector<10x3xf32>
    %39 = arith.subf %31, %38 : vector<10x3xf32>
    %40 = arith.mulf %39, %39 : vector<10x3xf32>
    %cst_17 = arith.constant dense<0.000000e+00> : vector<10xf32>
    %41 = vector.multi_reduction <add>, %40, %cst_17 [1] : vector<10x3xf32> to vector<10xf32>
    %42 = vector.shape_cast %41 : vector<10xf32> to vector<10x1xf32>
    %cst_18 = arith.constant 3.000000e+00 : f32
    %43 = vector.broadcast %cst_18 : f32 to vector<10x1xf32>
    %44 = arith.divf %42, %43 : vector<10x1xf32>
    %45 = vector.broadcast %37 : vector<10x1xf32> to vector<10x3xf32>
    %46 = arith.subf %31, %45 : vector<10x3xf32>
    %cst_19 = arith.constant 9.99999974E-6 : f32
    %47 = vector.broadcast %cst_19 : f32 to vector<10x1xf32>
    %48 = arith.addf %44, %47 : vector<10x1xf32>
    %49 = math.rsqrt %48 : vector<10x1xf32>
    %50 = vector.broadcast %49 : vector<10x1xf32> to vector<10x3xf32>
    %51 = arith.mulf %46, %50 : vector<10x3xf32>
    %52 = vector.broadcast %32 : vector<1x3xf32> to vector<10x3xf32>
    %53 = arith.mulf %52, %51 : vector<10x3xf32>
    %54 = vector.broadcast %33 : vector<1x3xf32> to vector<10x3xf32>
    %55 = arith.addf %53, %54 : vector<10x3xf32>
    %c0_20 = arith.constant 0 : index
    %c0_21 = arith.constant 0 : index
    %56 = vector.load %arg4[%c0_20, %c0_21] : memref<3x16xf32, #tpu.memory_space<vmem>>, vector<3x16xf32>
    %cst_22 = arith.constant dense<0.000000e+00> : vector<10x16xf32>
    %57 = tpu.matmul %55, %56, %cst_22 {dimension_numbers = #tpu.dot_dimension_numbers<[1], [0], [0], [1], [0, 0, 1, 1], [], []>} : vector<10x3xf32>, vector<3x16xf32>, vector<10x16xf32> -> vector<10x16xf32>
    %58 = vector.extract_strided_slice %0 {offsets = [0, 18], sizes = [1, 16], strides = [1, 1]} : vector<1x105xf32> to vector<1x16xf32>
    %59 = vector.broadcast %58 : vector<1x16xf32> to vector<10x16xf32>
    %60 = arith.addf %57, %59 : vector<10x16xf32>
    %cst_23 = arith.constant 0.000000e+00 : f32
    %61 = vector.broadcast %cst_23 : f32 to vector<10x16xf32>
    %62 = arith.maximumf %60, %61 : vector<10x16xf32>
    %c0_24 = arith.constant 0 : index
    %c0_25 = arith.constant 0 : index
    %63 = vector.load %arg5[%c0_24, %c0_25] : memref<16x3xf32, #tpu.memory_space<vmem>>, vector<16x3xf32>
    %cst_26 = arith.constant dense<0.000000e+00> : vector<10x3xf32>
    %64 = tpu.matmul %62, %63, %cst_26 {dimension_numbers = #tpu.dot_dimension_numbers<[1], [0], [0], [1], [0, 0, 1, 1], [], []>} : vector<10x16xf32>, vector<16x3xf32>, vector<10x3xf32> -> vector<10x3xf32>
    %65 = vector.extract_strided_slice %0 {offsets = [0, 34], sizes = [1, 3], strides = [1, 1]} : vector<1x105xf32> to vector<1x3xf32>
    %66 = vector.broadcast %65 : vector<1x3xf32> to vector<10x3xf32>
    %67 = arith.addf %64, %66 : vector<10x3xf32>
    %68 = arith.addf %67, %55 : vector<10x3xf32>
    %69 = vector.extract_strided_slice %0 {offsets = [0, 37], sizes = [1, 3], strides = [1, 1]} : vector<1x105xf32> to vector<1x3xf32>
    %70 = vector.extract_strided_slice %0 {offsets = [0, 40], sizes = [1, 3], strides = [1, 1]} : vector<1x105xf32> to vector<1x3xf32>
    %cst_27 = arith.constant dense<0.000000e+00> : vector<10xf32>
    %71 = vector.multi_reduction <add>, %68, %cst_27 [1] : vector<10x3xf32> to vector<10xf32>
    %72 = vector.shape_cast %71 : vector<10xf32> to vector<10x1xf32>
    %cst_28 = arith.constant 3.000000e+00 : f32
    %73 = vector.broadcast %cst_28 : f32 to vector<10x1xf32>
    %74 = arith.divf %72, %73 : vector<10x1xf32>
    %75 = vector.broadcast %74 : vector<10x1xf32> to vector<10x3xf32>
    %76 = arith.subf %68, %75 : vector<10x3xf32>
    %77 = arith.mulf %76, %76 : vector<10x3xf32>
    %cst_29 = arith.constant dense<0.000000e+00> : vector<10xf32>
    %78 = vector.multi_reduction <add>, %77, %cst_29 [1] : vector<10x3xf32> to vector<10xf32>
    %79 = vector.shape_cast %78 : vector<10xf32> to vector<10x1xf32>
    %cst_30 = arith.constant 3.000000e+00 : f32
    %80 = vector.broadcast %cst_30 : f32 to vector<10x1xf32>
    %81 = arith.divf %79, %80 : vector<10x1xf32>
    %82 = vector.broadcast %74 : vector<10x1xf32> to vector<10x3xf32>
    %83 = arith.subf %68, %82 : vector<10x3xf32>
    %cst_31 = arith.constant 9.99999974E-6 : f32
    %84 = vector.broadcast %cst_31 : f32 to vector<10x1xf32>
    %85 = arith.addf %81, %84 : vector<10x1xf32>
    %86 = math.rsqrt %85 : vector<10x1xf32>
    %87 = vector.broadcast %86 : vector<10x1xf32> to vector<10x3xf32>
    %88 = arith.mulf %83, %87 : vector<10x3xf32>
    %89 = vector.broadcast %69 : vector<1x3xf32> to vector<10x3xf32>
    %90 = arith.mulf %89, %88 : vector<10x3xf32>
    %91 = vector.broadcast %70 : vector<1x3xf32> to vector<10x3xf32>
    %92 = arith.addf %90, %91 : vector<10x3xf32>
    %93 = vector.extract_strided_slice %0 {offsets = [0, 43], sizes = [1, 3], strides = [1, 1]} : vector<1x105xf32> to vector<1x3xf32>
    %94 = vector.extract_strided_slice %0 {offsets = [0, 46], sizes = [1, 3], strides = [1, 1]} : vector<1x105xf32> to vector<1x3xf32>
    %cst_32 = arith.constant dense<0.000000e+00> : vector<10xf32>
    %95 = vector.multi_reduction <add>, %92, %cst_32 [1] : vector<10x3xf32> to vector<10xf32>
    %96 = vector.shape_cast %95 : vector<10xf32> to vector<10x1xf32>
    %cst_33 = arith.constant 3.000000e+00 : f32
    %97 = vector.broadcast %cst_33 : f32 to vector<10x1xf32>
    %98 = arith.divf %96, %97 : vector<10x1xf32>
    %99 = vector.broadcast %98 : vector<10x1xf32> to vector<10x3xf32>
    %100 = arith.subf %92, %99 : vector<10x3xf32>
    %101 = arith.mulf %100, %100 : vector<10x3xf32>
    %cst_34 = arith.constant dense<0.000000e+00> : vector<10xf32>
    %102 = vector.multi_reduction <add>, %101, %cst_34 [1] : vector<10x3xf32> to vector<10xf32>
    %103 = vector.shape_cast %102 : vector<10xf32> to vector<10x1xf32>
    %cst_35 = arith.constant 3.000000e+00 : f32
    %104 = vector.broadcast %cst_35 : f32 to vector<10x1xf32>
    %105 = arith.divf %103, %104 : vector<10x1xf32>
    %106 = vector.broadcast %98 : vector<10x1xf32> to vector<10x3xf32>
    %107 = arith.subf %92, %106 : vector<10x3xf32>
    %cst_36 = arith.constant 9.99999974E-6 : f32
    %108 = vector.broadcast %cst_36 : f32 to vector<10x1xf32>
    %109 = arith.addf %105, %108 : vector<10x1xf32>
    %110 = math.rsqrt %109 : vector<10x1xf32>
    %111 = vector.broadcast %110 : vector<10x1xf32> to vector<10x3xf32>
    %112 = arith.mulf %107, %111 : vector<10x3xf32>
    %113 = vector.broadcast %93 : vector<1x3xf32> to vector<10x3xf32>
    %114 = arith.mulf %113, %112 : vector<10x3xf32>
    %115 = vector.broadcast %94 : vector<1x3xf32> to vector<10x3xf32>
    %116 = arith.addf %114, %115 : vector<10x3xf32>
    %c0_37 = arith.constant 0 : index
    %c0_38 = arith.constant 0 : index
    %117 = vector.load %arg6[%c0_37, %c0_38] : memref<10x96xf32, #tpu.memory_space<vmem>>, vector<10x96xf32>
    %cst_39 = arith.constant dense<0.000000e+00> : vector<3x96xf32>
    %118 = tpu.matmul %116, %117, %cst_39 {dimension_numbers = #tpu.dot_dimension_numbers<[0], [0], [1], [1], [0, 1, 1, 1], [], []>} : vector<10x3xf32>, vector<10x96xf32>, vector<3x96xf32> -> vector<3x96xf32>
    %119 = vector.extract_strided_slice %0 {offsets = [0, 49], sizes = [1, 32], strides = [1, 1]} : vector<1x105xf32> to vector<1x32xf32>
    %120 = vector.extract_strided_slice %118 {offsets = [0, 0], sizes = [1, 32], strides = [1, 1]} : vector<3x96xf32> to vector<1x32xf32>
    %121 = arith.addf %119, %120 : vector<1x32xf32>
    %122 = vector.extract_strided_slice %118 {offsets = [1, 32], sizes = [1, 32], strides = [1, 1]} : vector<3x96xf32> to vector<1x32xf32>
    %123 = arith.addf %121, %122 : vector<1x32xf32>
    %124 = vector.extract_strided_slice %118 {offsets = [2, 64], sizes = [1, 32], strides = [1, 1]} : vector<3x96xf32> to vector<1x32xf32>
    %125 = arith.addf %123, %124 : vector<1x32xf32>
    %cst_40 = arith.constant 0.000000e+00 : f32
    %126 = vector.broadcast %cst_40 : f32 to vector<1x32xf32>
    %127 = arith.maximumf %125, %126 : vector<1x32xf32>
    %c0_41 = arith.constant 0 : index
    %c0_42 = arith.constant 0 : index
    %128 = vector.load %arg7[%c0_41, %c0_42] : memref<32x16xf32, #tpu.memory_space<vmem>>, vector<32x16xf32>
    %cst_43 = arith.constant dense<0.000000e+00> : vector<1x16xf32>
    %129 = tpu.matmul %127, %128, %cst_43 {dimension_numbers = #tpu.dot_dimension_numbers<[1], [0], [0], [1], [0, 0, 1, 1], [], []>} : vector<1x32xf32>, vector<32x16xf32>, vector<1x16xf32> -> vector<1x16xf32>
    %130 = vector.extract_strided_slice %0 {offsets = [0, 81], sizes = [1, 16], strides = [1, 1]} : vector<1x105xf32> to vector<1x16xf32>
    %131 = arith.addf %129, %130 : vector<1x16xf32>
    %cst_44 = arith.constant 0.000000e+00 : f32
    %132 = vector.broadcast %cst_44 : f32 to vector<1x16xf32>
    %133 = arith.maximumf %131, %132 : vector<1x16xf32>
    %c0_45 = arith.constant 0 : index
    %c0_46 = arith.constant 0 : index
    %134 = vector.load %arg8[%c0_45, %c0_46] : memref<16x8xf32, #tpu.memory_space<vmem>>, vector<16x8xf32>
    %cst_47 = arith.constant dense<0.000000e+00> : vector<1x8xf32>
    %135 = tpu.matmul %133, %134, %cst_47 {dimension_numbers = #tpu.dot_dimension_numbers<[1], [0], [0], [1], [0, 0, 1, 1], [], []>} : vector<1x16xf32>, vector<16x8xf32>, vector<1x8xf32> -> vector<1x8xf32>
    %136 = vector.extract_strided_slice %0 {offsets = [0, 97], sizes = [1, 8], strides = [1, 1]} : vector<1x105xf32> to vector<1x8xf32>
    %137 = arith.addf %135, %136 : vector<1x8xf32>
    %cst_48 = arith.constant dense<0xFF800000> : vector<1xf32>
    %138 = vector.multi_reduction <maximumf>, %137, %cst_48 [1] : vector<1x8xf32> to vector<1xf32>
    %139 = vector.shape_cast %138 : vector<1xf32> to vector<1x1xf32>
    %140 = vector.broadcast %139 : vector<1x1xf32> to vector<1x8xf32>
    %141 = arith.subf %137, %140 : vector<1x8xf32>
    %142 = math.exp %141 : vector<1x8xf32>
    %cst_49 = arith.constant dense<0.000000e+00> : vector<1xf32>
    %143 = vector.multi_reduction <add>, %142, %cst_49 [1] : vector<1x8xf32> to vector<1xf32>
    %144 = vector.shape_cast %143 : vector<1xf32> to vector<1x1xf32>
    %145 = vector.broadcast %144 : vector<1x1xf32> to vector<1x8xf32>
    %146 = arith.divf %142, %145 : vector<1x8xf32>
    %c0_50 = arith.constant 0 : index
    %c0_51 = arith.constant 0 : index
    %147 = vector.load %arg10[%c0_50, %c0_51] : memref<1x8xf32, #tpu.memory_space<vmem>>, vector<1x8xf32>
    tpu.vector_store %arg10[%c0_50, %c0_51], %146 {strides = array<i32>} : memref<1x8xf32, #tpu.memory_space<vmem>>, vector<1x8xf32>,
    return
  }
}

</mosaic_0001>

<bundles_post_ra>
// kernel: music1_forward.1
= control target key start
LH: loop header
LB: loop body
LE: loop exit
PB: predicated region body
PF: predicated region fallthrough
CT: control target
= control target key end

     0   :  { %vm57_vm0 = vcmask 1042432   ;;  %vm50_vm1 = vcmask 23552   ;;  %s1567_s0 = inlined_call_operand.vmem [shape: f32[10,3], index: 0, kind: input, shape index: {}]   ;;  %s1568_s1 = inlined_call_operand.vmem [shape: f32[10,3], index: 1, kind: input, shape index: {}]   ;;  %s1569_s2 = inlined_call_operand.vmem [shape: f32[3,9], index: 2, kind: input, shape index: {}]   ;;  %s1570_s3 = inlined_call_operand.vmem [shape: f32[3,3], index: 3, kind: input, shape index: {}]   ;;  %s1571_s4 = inlined_call_operand.vmem [shape: f32[3,16], index: 4, kind: input, shape index: {}]   ;;  %s1572_s5 = inlined_call_operand.vmem [shape: f32[16,3], index: 5, kind: input, shape index: {}]   ;;  %s1573_s6 = inlined_call_operand.vmem [shape: f32[10,96], index: 6, kind: input, shape index: {}]   ;;  %s1574_s7 = inlined_call_operand.vmem [shape: f32[32,16], index: 7, kind: input, shape index: {}]   ;;  %s1575_s8 = inlined_call_operand.vmem [shape: f32[16,8], index: 8, kind: input, shape index: {}]   ;;  %s1576_s9 = inlined_call_operand.vmem [shape: f32[1,105], index: 9, kind: input, shape index: {}]   ;;  %s1577_s10 = inlined_call_operand.hbm [shape: f32[1,8], index: 10, kind: output, shape index: {}]  }
   0x1   :  { %v43_v0 = vld [vmem:[%s1569_s2] sm:$0x7]  ;;  %v38_v4 = vld [vmem:[%s1567_s0 + $0x8] sm:$0x3] }
   0x2   :  { %v37_v1 = vld [vmem:[%s1567_s0] sm:$0xff]  ;;  %1152 = vmatprep.subr.msk.mxu0 %vm57_vm0, %v43_v0  ;;  %v40_v5 = vld [vmem:[%s1568_s1 + $0x8] sm:$0x3] }
   0x3   :  { %v39_v2 = vld [vmem:[%s1568_s1] sm:$0xff]  ;;  %1153 = vmatpush3.msk.msra.mxu0 %vm57_vm0, %v43_v0  ;;  %v1420_v6 = vadd.f32 %v40_v5, %v38_v4 }
   0x4   :  { %v1411_v3 = vadd.f32 %v39_v2, %v37_v1 }
   0x5   :  { %15 = vsyncpa [#allocation3], 0  ;;  %v45_v7 = vlaneseq  ;;  %v1432_v10 = vld [vmem:[%s1576_s9] sm:$0x1]  ;;  %s1323_s1 = smov 125   ;;  %vm231_vm3 = vcmask 74752  }
   0x6   :  { %1154 = vmatprep.mubr.msk.f32.mxu0 %vm50_vm1, %v1411_v3  ;;  %vm1214_vm2 = vmpackc.low %vm50_vm1, %vm50_vm1  ;;  %vm227_vm4 = vcmask 80896   ;;  %s1324_s9 = smov 122   ;;  %vm262_vm5 = vcmask 1041408   ;;  %vm1325_vm6 = vmmov 1   ;;  %v340_v44 = vld [vmem:[%s1570_s3] sm:$0x7] }
   0x7   :  { %1155 = vmatmul.mubr.msk.f32.vlgmr.msra.gmra.mrb[0].mxu0 %vm50_vm1, %v1420_v6  ;;  %v1426_v8 = vshrl.u32 %v45_v7, 7  ;;  %vm1450_vm7 = vmpackc.low %vm262_vm5, %vm1325_vm6  ;;  %s1326_s25 = smov 119   ;;  %vm433_vm8 = vcmask 17408   ;;  %s1327_s27 = smov 12   ;;  %vm572_vm9 = vcmask 130048   ;;  %vm1335_vm10 = vmmov 0  }
   0x8   :  { %s1329_s28 = smov 110   ;;  %s1330_s13 = smov 94   ;;  %v1338_v42 = vmov 1966171168   ;;  %vm919_vm11 = vcmask 261120   ;;  %vm1071_vm12 = vcmask 57344  }
   0x9   :  { %v47_v9 = vsub.s32 0, %v1426_v8  ;;  %s1332_s14 = smov 91   ;;  %s1333_s15 = smov 6  }
   0xa   :  { %s1339_s20 = smov 49   ;;  %s1341_s3 = smov 113  }
   0xb   :  { %v1437_v11 = vrot.slane %v1432_v10, %v47_v9  ;;  %s1343_s26 = smov 47   ;;  %s1344_s30 = smov 31  }
  0xda   :  { %v1156_v12 = vpop.f32.mrb[0].mxu0 }
  0xdb   :  { %v133_v13 = vadd.f32 %v1156_v12, %v1437_v11  ;;  %v127_v14 = vpop.f32.mrb[1].mxu0 }
  0xdc   :  { %v128_v15 = vadd.f32 %v127_v14, %v1437_v11 }
  0xde   :  { %1161 = vmatprep.mubr.msk.f32.mxu1 %vm50_vm1, %v128_v15  ;;  %v1265_v16 = vpack.i.bf16 %v133_v13, %v128_v15 }
  0xe0   :  { %1266 = vrot.lane.b32.xlu0 %v1265_v16, %s1323_s1 }
 0x152   :  { %v1267_v17 = vpop.permute.xlu0 %1266 }
 0x153   :  { %v1269_v18 = vunpack.i.h.bf16 %v1267_v17  ;;  %v1268_v19 = vunpack.i.l.bf16 %v1267_v17 }
 0x155   :  { %v1213_v20 = vpack.c.bf16 %v1269_v18, %v1268_v19 }
 0x157   :  { %1215 = vmatprep.subr.msk.bf16.mxu1 %vm1214_vm2, %v1213_v20 }
 0x158   :  { %1218 = vmatpush3.bf16.xpose.msk.msra.mxu1 %vm1214_vm2, %v1213_v20 }
 0x15f   :  { %1162 = vmatmul.mubr.msk.f32.vlgmr.msra.gmra.mrb[0].mxu1 %vm50_vm1, %v133_v13 }
 0x232   :  { %v1163_v21 = vpop.f32.mrb[0].mxu1 }
 0x233   :  { %v226_v22 = vmul.f32 0.57735026, %v1163_v21  ;;  %v216_v23 = vpop.f32.mrb[1].mxu1 }
 0x234   :  { %v225_v24 = vmul.f32 0.57735026, %v216_v23 }
 0x235   :  { %v232_v25 = vsel %vm231_vm3, %v226_v22, -inf }
 0x236   :  { %233 = vmax.xlane.f32.xlu1 %v232_v25  ;;  %v228_v26 = vsel %vm227_vm4, %v225_v24, -inf }
 0x237   :  { %229 = vmax.xlane.f32.xlu0 %v228_v26 }
 0x2c3   :  { %v234_v27 = vpop.xlane.xlu1 %233 }
 0x2c4   :  { %v236_v28 = vsub.f32 %v226_v22, %v234_v27  ;;  %v230_v29 = vpop.xlane.xlu0 %229 }
 0x2c5   :  { %v235_v30 = vsub.f32 %v225_v24, %v230_v29 }
 0x2c6   :  { %v239_v31 = vmul.f32 1.442695, %v236_v28 }
 0x2c7   :  { %v237_v32 = vmul.f32 1.442695, %v235_v30  ;;  %v567_v30 = vld [vmem:[%s1572_s5] sm:$0xff] }
 0x2c8   :  { %1275 = vpow2.f32 %v239_v31  ;;  %v568_v31 = vld [vmem:[%s1572_s5 + $0x8] sm:$0xff]  ;;  %s1331_s5 = smov 37  }
 0x2c9   :  { %1277 = vpow2.f32 %v237_v32  ;;  %v1225_v32 = vpack.c.bf16 %v568_v31, %v567_v30 }
 0x2d2   :  { %v1276_v33 = vpop.eup %1275 }
 0x2d3   :  { %v244_v34 = vsel %vm231_vm3, %v1276_v33, 0.0  ;;  %v1278_v35 = vpop.eup %1277 }
 0x2d4   :  { %245 = vadd.xlane.f32.xlu1 %v244_v34  ;;  %v241_v36 = vsel %vm227_vm4, %v1278_v35, 0.0 }
 0x2d8   :  { %242 = vadd.xlane.f32.xlu1 %v241_v36 }
 0x2e9   :  { %1271 = vrot.lane.b32.xlu1 %v1265_v16, %s1324_s9  ;;  %v473_v16 = vld [vmem:[%s1571_s4] sm:$0x7]  ;;  %s1328_s4 = smov 116  }
 0x2ea   :  { %1176 = vmatprep.subr.msk.mxu1 %vm57_vm0, %v473_v16 }
 0x2eb   :  { %1177 = vmatpush3.msk.msra.mxu1 %vm57_vm0, %v473_v16 }
 0x2ed   :  { %341 = vrot.lane.b32.xlu1 %v1437_v11, %s1326_s25  ;;  %s1340_s25 = smov 17  }
 0x361   :  { %v246_v37 = vpop.xlane.xlu1 %245 }
 0x362   :  { %1279 = vrcp.f32 %v246_v37 }
 0x365   :  { %v243_v38 = vpop.xlane.xlu1 %242 }
 0x366   :  { %1281 = vrcp.f32 %v243_v38 }
 0x369   :  { %v1272_v39 = vpop.permute.xlu1 %1271 }
 0x36a   :  { %v1274_v40 = vunpack.i.h.bf16 %v1272_v39  ;;  %v1273_v41 = vunpack.i.l.bf16 %v1272_v39 }
 0x36c   :  { %v1219_v43 = vpack.c.bf16 %v1274_v40, %v1273_v41  ;;  %v1280_v45 = vpop.eup %1279 }
 0x36d   :  { %v250_v48 = vmul.f32 %v1280_v45, %v1276_v33  ;;  %v342_v51 = vpop.permute.xlu1 %341 }
 0x36e   :  { %1221 = vmatprep.subr.msk.bf16.mxu0 %vm1450_vm7, %v1219_v43 }
 0x36f   :  { %1224 = vmatpush3.bf16.msk.msra.mxu0 %vm1450_vm7, %v1219_v43 }
 0x370   :  { %v1282_v46 = vpop.eup %1281  ;;  %1171 = vmatprep.subr.msk.mxu0 %vm57_vm0, %v340_v44 }
 0x371   :  { %v249_v47 = vmul.f32 %v1282_v46, %v1278_v35 }
 0x373   :  { %1168 = vmatprep.mubr.msk.f32.mxu0 %vm227_vm4, %v249_v47 }
 0x374   :  { %1169 = vmatmul.mubr.msk.f32.vlgmr.msra.gmra.mrb[2].mxu0 %vm227_vm4, %v250_v48 }
 0x375   :  { %1172 = vmatpush3.msk.msra.mxu0 %vm57_vm0, %v340_v44 }
 0x376   :  { %1226 = vmatprep.subr.bf16.mxu0 %v1225_v32 }
 0x447   :  { %v1170_v49 = vpop.f32.mrb[2].mxu0 }
 0x448   :  { %v331_v50 = vpop.f32.mrb[3].mxu0 }
 0x449   :  { %1173 = vmatprep.mubr.msk.f32.mxu0 %vm50_vm1, %v331_v50 }
 0x44a   :  { %1174 = vmatmul.mubr.msk.f32.vlgmr.msra.gmra.mrb[4].mxu0 %vm50_vm1, %v1170_v49 }
 0x44b   :  { %1228 = vmatpush3.bf16.msra.mxu0 %v1225_v32 }
 0x51d   :  { %v1175_v52 = vpop.f32.mrb[4].mxu0 }
 0x51e   :  { %v425_v53 = vadd.f32 %v1175_v52, %v342_v51  ;;  %v419_v54 = vpop.f32.mrb[5].mxu0 }
 0x51f   :  { %v420_v55 = vadd.f32 %v419_v54, %v342_v51 }
 0x520   :  { %v429_v56 = vadd.f32 %v425_v53, %v1420_v6 }
 0x521   :  { %v428_v57 = vadd.f32 %v420_v55, %v1411_v3 }
 0x522   :  { %v434_v58 = vsel %vm433_vm8, %v429_v56, 0.0 }
 0x523   :  { %435 = vadd.xlane.f32.xlu0 %v434_v58  ;;  %v430_v59 = vsel %vm50_vm1, %v428_v57, 0.0 }
 0x524   :  { %431 = vadd.xlane.f32.xlu1 %v430_v59 }
 0x535   :  { %468 = vrot.lane.b32.xlu1 %v1437_v11, %s1323_s1 }
 0x5b0   :  { %v436_v60 = vpop.xlane.xlu0 %435 }
 0x5b1   :  { %v439_v61 = vmul.f32 0.33333334, %v436_v60  ;;  %v432_v62 = vpop.xlane.xlu1 %431 }
 0x5b2   :  { %v438_v63 = vmul.f32 0.33333334, %v432_v62 }
 0x5b3   :  { %v441_v0 = vsub.f32 %v429_v56, %v439_v61 }
 0x5b4   :  { %v440_v1 = vsub.f32 %v428_v57, %v438_v63 }
 0x5b5   :  { %v443_v5 = vmul.f32 %v441_v0, %v441_v0  ;;  %v1481_v22 = vpop.permute.xlu1 %468 }
 0x5b6   :  { %v442_v2 = vmul.f32 %v440_v1, %v440_v1 }
 0x5b7   :  { %v447_v3 = vsel %vm433_vm8, %v443_v5, 0.0 }
 0x5b8   :  { %v444_v4 = vsel %vm50_vm1, %v442_v2, 0.0 }
 0x5b9   :  { %445 = vadd.xlane.f32.xlu0 %v444_v4 }
 0x5bd   :  { %448 = vadd.xlane.f32.xlu0 %v447_v3 }
 0x646   :  { %v446_v6 = vpop.xlane.xlu0 %445 }
 0x647   :  { %v450_v7 = vmul.f32 0.33333334, %v446_v6 }
 0x649   :  { %v452_v12 = vadd.f32 1e-05, %v450_v7 }
 0x64a   :  { %v449_v13 = vpop.xlane.xlu0 %448 }
 0x64b   :  { %1283 = vrsqrt.f32 %v452_v12  ;;  %v451_v14 = vmul.f32 0.33333334, %v449_v13 }
 0x64d   :  { %v453_v15 = vadd.f32 1e-05, %v451_v14 }
 0x64f   :  { %1285 = vrsqrt.f32 %v453_v15 }
 0x655   :  { %v1284_v17 = vpop.eup %1283 }
 0x656   :  { %v456_v18 = vmul.f32 %v1284_v17, %v440_v1 }
 0x658   :  { %460 = vrot.lane.b32.xlu0 %v456_v18, %s1327_s27 }
 0x659   :  { %v1286_v19 = vpop.eup %1285 }
 0x65a   :  { %v457_v20 = vmul.f32 %v1286_v19, %v441_v0 }
 0x65c   :  { %462 = vrot.lane.b32.xlu0 %v457_v20, %s1327_s27 }
 0x6ca   :  { %v461_v21 = vpop.permute.xlu0 %460 }
 0x6cb   :  { %v466_v23 = vmul.f32 %v461_v21, %v1437_v11 }
 0x6cd   :  { %v471_v24 = vadd.f32 %v1481_v22, %v466_v23 }
 0x6ce   :  { %v463_v25 = vpop.permute.xlu0 %462 }
 0x6cf   :  { %v467_v26 = vmul.f32 %v463_v25, %v1437_v11  ;;  %476 = vrot.lane.b32.xlu0 %v471_v24, %s1328_s4 }
 0x6d1   :  { %v472_v27 = vadd.f32 %v1481_v22, %v467_v26 }
 0x6d3   :  { %478 = vrot.lane.b32.xlu0 %v472_v27, %s1328_s4 }
 0x6d7   :  { %480 = vrot.lane.b32.xlu0 %v1437_v11, %s1329_s28 }
 0x6db   :  { %569 = vrot.lane.b32.xlu0 %v1437_v11, %s1330_s13 }
 0x741   :  { %v477_v28 = vpop.permute.xlu0 %476 }
 0x742   :  { %1178 = vmatprep.mubr.msk.f32.mxu1 %vm50_vm1, %v477_v28 }
 0x745   :  { %v479_v29 = vpop.permute.xlu0 %478 }
 0x746   :  { %1179 = vmatmul.mubr.msk.f32.vlgmr.msra.gmra.mrb[2].mxu1 %vm50_vm1, %v479_v29 }
 0x749   :  { %v481_v33 = vpop.permute.xlu0 %480 }
 0x74d   :  { %v570_v40 = vpop.permute.xlu0 %569 }
 0x819   :  { %v1180_v34 = vpop.f32.mrb[2].mxu1 }
 0x81a   :  { %v562_v35 = vadd.f32 %v1180_v34, %v481_v33  ;;  %v556_v36 = vpop.f32.mrb[3].mxu1 }
 0x81b   :  { %v557_v37 = vadd.f32 %v556_v36, %v481_v33 }
 0x81c   :  { %v566_v39 = vmax.f32 %v562_v35, 0.0 }
 0x81d   :  { %v565_v38 = vmax.f32 %v557_v37, 0.0 }
 0x81f   :  { %1185 = vmatprep.mubr.msk.f32.mxu0 %vm572_vm9, %v565_v38 }
 0x820   :  { %1186 = vmatmul.mubr.msk.f32.vlgmr.msra.gmra.mrb[6].mxu0 %vm572_vm9, %v566_v39 }
 0x8f3   :  { %v1187_v41 = vpop.f32.mrb[6].mxu0 }
 0x8f4   :  { %v651_v43 = vadd.f32 %v1187_v41, %v570_v40  ;;  %v645_v44 = vpop.f32.mrb[7].mxu0 }
 0x8f5   :  { %v646_v45 = vadd.f32 %v645_v44, %v570_v40  ;;  %v750_v44 = vld [vmem:[%s1573_s6] sm:$0xff] }
 0x8f6   :  { %v657_v46 = vadd.f32 %v651_v43, %v479_v29 }
 0x8f7   :  { %v656_v47 = vadd.f32 %v646_v45, %v477_v28  ;;  %v751_v45 = vld [vmem:[%s1573_s6 + $0x8] sm:$0x3]  ;;  %s1337_s6 = smov 85  }
 0x8f8   :  { %v661_v48 = vsel %vm433_vm8, %v657_v46, 0.0 }
 0x8f9   :  { %662 = vadd.xlane.f32.xlu0 %v661_v48  ;;  %v658_v49 = vsel %vm50_vm1, %v656_v47, 0.0  ;;  %v1336_v48 = vmov 0.0  }
 0x8fa   :  { %659 = vadd.xlane.f32.xlu1 %v658_v49  ;;  %1192 = vmatprep.mubr.msk.f32.mxu1 %vm1335_vm10, %v1336_v48 }
 0x8fb   :  { %1203 = vmatprep.mubr.msk.f32.mxu0 %vm1335_vm10, %v1336_v48 }
 0x986   :  { %v663_v50 = vpop.xlane.xlu0 %662 }
 0x987   :  { %v665_v51 = vmul.f32 0.33333334, %v663_v50  ;;  %v660_v52 = vpop.xlane.xlu1 %659 }
 0x988   :  { %v664_v53 = vmul.f32 0.33333334, %v660_v52 }
 0x989   :  { %v667_v54 = vsub.f32 %v657_v46, %v665_v51  ;;  %v1334_v46 = vmov 0.0|0.0  }
 0x98a   :  { %v666_v55 = vsub.f32 %v656_v47, %v664_v53  ;;  %1229 = vmatprep.subr.bf16.mxu1 %v1334_v46  ;;  %v1230_v47 = vpack.c.bf16 %v751_v45, %v750_v44  ;;  %1233 = vmatprep.subr.bf16.mxu0 %v1334_v46 }
 0x98b   :  { %v669_v56 = vmul.f32 %v667_v54, %v667_v54 }
 0x98c   :  { %v668_v57 = vmul.f32 %v666_v55, %v666_v55  ;;  %1232 = vmatpush3.bf16.msk.msra.mxu1 %vm1450_vm7, %v1230_v47 }
 0x98d   :  { %v673_v58 = vsel %vm433_vm8, %v669_v56, 0.0  ;;  %1239 = vmatprep.subr.bf16.mxu1 %v1334_v46 }
 0x98e   :  { %674 = vadd.xlane.f32.xlu1 %v673_v58  ;;  %v670_v59 = vsel %vm50_vm1, %v668_v57, 0.0  ;;  %v870_v58 = vunpack.c.l.s4 %v1338_v42 }
 0x98f   :  { %671 = vadd.xlane.f32.xlu0 %v670_v59 }
 0x990   :  { %v871_v59 = vunpack.c.0.s8 %v870_v58 }
 0xa1b   :  { %v675_v60 = vpop.xlane.xlu1 %674 }
 0xa1c   :  { %v677_v61 = vmul.f32 0.33333334, %v675_v60  ;;  %v672_v62 = vpop.xlane.xlu0 %671  ;;  %v874_v60 = vsub.s32 %v871_v59, %v1426_v8 }
 0xa1d   :  { %v676_v63 = vmul.f32 0.33333334, %v672_v62 }
 0xa1e   :  { %v679_v0 = vadd.f32 1e-05, %v677_v61 }
 0xa1f   :  { %v678_v1 = vadd.f32 1e-05, %v676_v63 }
 0xa20   :  { %1287 = vrsqrt.f32 %v679_v0 }
 0xa21   :  { %1289 = vrsqrt.f32 %v678_v1  ;;  %v905_v1 = vld [vmem:[%s1574_s7] sm:$0xff] }
 0xa2a   :  { %v1288_v2 = vpop.eup %1287 }
 0xa2b   :  { %v1290_v4 = vpop.eup %1289  ;;  %v683_v5 = vmul.f32 %v1288_v2, %v667_v54  ;;  %v906_v2 = vld [vmem:[%s1574_s7 + $0x8] sm:$0xff] }
 0xa2c   :  { %v682_v3 = vmul.f32 %v1290_v4, %v666_v55  ;;  %v907_v4 = vld [vmem:[%s1574_s7 + $0x10] sm:$0xff] }
 0xa2d   :  { %688 = vrot.lane.b32.xlu1 %v683_v5, %s1331_s5 }
 0xa2e   :  { %686 = vrot.lane.b32.xlu0 %v682_v3, %s1331_s5  ;;  %v1234_v3 = vpack.c.bf16 %v906_v2, %v905_v1 }
 0xa30   :  { %1235 = vmatpush3.bf16.msra.mxu0 %v1234_v3 }
 0xa31   :  { %1236 = vmatprep.subr.bf16.mxu0 %v1334_v46 }
 0xa9f   :  { %v689_v6 = vpop.permute.xlu1 %688 }
 0xaa0   :  { %v693_v7 = vmul.f32 %v689_v6, %v1437_v11  ;;  %v687_v12 = vpop.permute.xlu0 %686  ;;  %v908_v6 = vld [vmem:[%s1574_s7 + $0x18] sm:$0xff]  ;;  %s1342_s7 = smov 79  }
 0xaa1   :  { %v692_v13 = vmul.f32 %v687_v12, %v1437_v11 }
 0xaa2   :  { %v695_v14 = vadd.f32 %v693_v7, %v1481_v22  ;;  %v1237_v7 = vpack.c.bf16 %v908_v6, %v907_v4 }
 0xaa3   :  { %v694_v15 = vadd.f32 %v692_v13, %v1481_v22 }
 0xaa4   :  { %700 = vrot.lane.b32.xlu0 %v695_v14, %s1332_s14  ;;  %1238 = vmatpush3.bf16.msra.mxu0 %v1237_v7 }
 0xaa5   :  { %698 = vrot.lane.b32.xlu1 %v694_v15, %s1332_s14 }
 0xb16   :  { %v701_v16 = vpop.permute.xlu0 %700 }
 0xb17   :  { %v699_v17 = vpop.permute.xlu1 %698  ;;  %v707_v18 = vsel %vm433_vm8, %v701_v16, 0.0 }
 0xb18   :  { %708 = vadd.xlane.f32.xlu0 %v707_v18  ;;  %v704_v19 = vsel %vm50_vm1, %v699_v17, 0.0 }
 0xb19   :  { %705 = vadd.xlane.f32.xlu1 %v704_v19 }
 0xba5   :  { %v709_v20 = vpop.xlane.xlu0 %708 }
 0xba6   :  { %v711_v21 = vmul.f32 0.33333334, %v709_v20  ;;  %v706_v23 = vpop.xlane.xlu1 %705 }
 0xba7   :  { %v710_v24 = vmul.f32 0.33333334, %v706_v23  ;;  %v993_v23 = vld [vmem:[%s1575_s8] sm:$0xff] }
 0xba8   :  { %v713_v25 = vsub.f32 %v695_v14, %v711_v21 }
 0xba9   :  { %v712_v26 = vsub.f32 %v694_v15, %v710_v24 }
 0xbaa   :  { %v715_v27 = vmul.f32 %v713_v25, %v713_v25 }
 0xbab   :  { %v714_v28 = vmul.f32 %v712_v26, %v712_v26 }
 0xbac   :  { %720 = vrot.lane.b32.xlu1 %v715_v27, %s1332_s14 }
 0xbad   :  { %718 = vrot.lane.b32.xlu0 %v714_v28, %s1332_s14 }
 0xc1e   :  { %v721_v29 = vpop.permute.xlu1 %720 }
 0xc1f   :  { %v719_v30 = vpop.permute.xlu0 %718  ;;  %v727_v31 = vsel %vm433_vm8, %v721_v29, 0.0 }
 0xc20   :  { %728 = vadd.xlane.f32.xlu0 %v727_v31  ;;  %v724_v32 = vsel %vm50_vm1, %v719_v30, 0.0 }
 0xc21   :  { %725 = vadd.xlane.f32.xlu1 %v724_v32 }
 0xcad   :  { %v729_v33 = vpop.xlane.xlu0 %728 }
 0xcae   :  { %v731_v34 = vmul.f32 0.33333334, %v729_v33  ;;  %v726_v35 = vpop.xlane.xlu1 %725 }
 0xcaf   :  { %v730_v36 = vmul.f32 0.33333334, %v726_v35 }
 0xcb0   :  { %v733_v37 = vadd.f32 1e-05, %v731_v34 }
 0xcb1   :  { %v732_v38 = vadd.f32 1e-05, %v730_v36 }
 0xcb2   :  { %1291 = vrsqrt.f32 %v733_v37 }
 0xcb3   :  { %1293 = vrsqrt.f32 %v732_v38 }
 0xcbc   :  { %v1292_v39 = vpop.eup %1291 }
 0xcbd   :  { %v1294_v40 = vpop.eup %1293  ;;  %v737_v41 = vmul.f32 %v1292_v39, %v713_v25 }
 0xcbe   :  { %v736_v43 = vmul.f32 %v1294_v40, %v712_v26 }
 0xcbf   :  { %742 = vrot.lane.b32.xlu1 %v737_v41, %s1333_s15 }
 0xcc0   :  { %740 = vrot.lane.b32.xlu0 %v736_v43, %s1333_s15 }
 0xd31   :  { %v743_v49 = vpop.permute.xlu1 %742 }
 0xd32   :  { %v747_v50 = vmul.f32 %v743_v49, %v1437_v11  ;;  %v741_v51 = vpop.permute.xlu0 %740 }
 0xd33   :  { %v746_v52 = vmul.f32 %v741_v51, %v1437_v11 }
 0xd34   :  { %v749_v53 = vadd.f32 %v747_v50, %v1481_v22 }
 0xd35   :  { %v748_v54 = vadd.f32 %v746_v52, %v1481_v22 }
 0xd36   :  { %756 = vrot.lane.b32.xlu0 %v749_v53, %s1337_s6 }
 0xd37   :  { %754 = vrot.lane.b32.xlu1 %v748_v54, %s1337_s6 }
 0xda8   :  { %v757_v56 = vpop.permute.xlu0 %756 }
 0xda9   :  { %v755_v55 = vpop.permute.xlu1 %754 }
 0xdaa   :  { %760 = vxpose.xlu1.b32.start [1/2] (short) (narrow) %v755_v55, 8 }
 0xdae   :  { %761 = vxpose.xlu1.b32.end [2/2] (short) (narrow) %v757_v56, 8 }
 0xe2a   :  { %v776_v57 = vpop.trf.xlu1 }
 0xe2b   :  { %1193 = vmatmul.mubr.msk.f32.vlgmr.msra.gmra.mrb[4].mxu1 %vm227_vm4, %v776_v57 }
 0xe2c   :  { %1210 = vmatprep.mubr.msk.f32.mxu1 %vm1335_vm10, %v1336_v48 }
 0xefe   :  { %v864_v61 = vpop.f32.mrb[4].mxu1 }
 0xeff   :  { %v875_v62 = vrot.slane %v864_v61, %v874_v60  ;;  %v1194_v22 = vpop.f32.mrb[5].mxu1 }
 0xf01   :  { %v882_v63 = vrot.slane %v875_v62, %v874_v60  ;;  %v887_v0 = vcombine.high %v875_v62, %v875_v62 }
 0xf03   :  { %883 = vrot.lane.b32.xlu0 %v882_v63, %s1339_s20  ;;  %v894_v5 = vrot.slane %v887_v0, %v874_v60  ;;  %v899_v12 = vcombine.high %v882_v63, %v882_v63 }
 0xf07   :  { %895 = vrot.lane.b32.xlu0 %v894_v5, %s1340_s25 }
 0xf0b   :  { %900 = vrot.lane.b32.xlu0 %v899_v12, %s1341_s3 }
 0xf75   :  { %v884_v13 = vpop.permute.xlu0 %883 }
 0xf76   :  { %v886_v15 = vadd.f32 %v884_v13, %v1432_v10  ;;  %v994_v10 = vld [vmem:[%s1575_s8 + $0x8] sm:$0xff]  ;;  %s1345_s8 = smov [#allocation2]  }
 0xf77   :  { %v1240_v24 = vpack.c.bf16 %v994_v10, %v993_v23  ;;  %s1090_s11 = sshll.u32 %s1345_s8, 4  ;;  %s1091_s11 = int_to_ptr.vmem [resolvable:$true] %s1090_s11 }
 0xf78   :  { %s1299_s12 = scalar_lea.vmem %s1091_s11, 16  ;;  %s1303_s13 = scalar_lea.vmem %s1091_s11, 32 }
 0xf79   :  { %v896_v14 = vpop.permute.xlu0 %895  ;;  %1241 = vmatpush3.bf16.msra.mxu1 %v1240_v24  ;;  %p1300_p0 = scmp.ne.s32.totalorder %s1091_s11, %s1299_s12  ;;  %p1304_p1 = scmp.lt.s32.totalorder %s1091_s11, %s1091_s11 }
 0xf7a   :  { %v898_v16 = vadd.f32 %v896_v14, %v886_v15  ;;  %p1305_p2 = scmp.lt.s32.totalorder %s1303_s13, %s1299_s12 }
 0xf7c   :  { %p1306_p3 = por %p1305_p2, %p1304_p1 }
 0xf7d   :  { %v901_v17 = vpop.permute.xlu0 %900 }
 0xf7e   :  { %v903_v18 = vadd.f32 %v901_v17, %v898_v16  ;;  %p1307_p4 = pnand %p1306_p3, %p1300_p0 }
 0xf80   :  { %v904_v19 = vmax.f32 %v903_v18, 0.0 }
 0xf82   :  { %v913_v20 = vrot.slane %v904_v19, %v47_v9 }
 0xf84   :  { %914 = vrot.lane.b32.xlu0 %v913_v20, %s1342_s7 }
 0xf88   :  { %916 = vrot.lane.b32.xlu0 %v1437_v11, %s1343_s26 }
 0xf8c   :  { %995 = vrot.lane.b32.xlu0 %v1437_v11, %s1344_s30 }
 0xff6   :  { %v915_v21 = vpop.permute.xlu0 %914 }
 0xff7   :  { %1204 = vmatmul.mubr.msk.f32.vlgmr.msra.gmra.mrb[8].mxu0 %vm919_vm11, %v915_v21 }
 0xffa   :  { %v917_v8 = vpop.permute.xlu0 %916 }
 0xffe   :  { %v996_v28 = vpop.permute.xlu0 %995 }
0x10ca   :  { %v988_v9 = vpop.f32.mrb[8].mxu0 }
0x10cb   :  { %v989_v25 = vadd.f32 %v988_v9, %v917_v8  ;;  %v1205_v26 = vpop.f32.mrb[9].mxu0 }
0x10cd   :  { %v992_v27 = vmax.f32 %v989_v25, 0.0 }
0x10cf   :  { %1211 = vmatmul.mubr.msk.f32.vlgmr.msra.gmra.mrb[6].mxu1 %vm572_vm9, %v992_v27 }
0x11a2   :  { %v1067_v29 = vpop.f32.mrb[6].mxu1 }
0x11a3   :  { %v1068_v30 = vadd.f32 %v1067_v29, %v996_v28  ;;  %v1212_v31 = vpop.f32.mrb[7].mxu1 }
0x11a5   :  { %v1072_v32 = vsel %vm1071_vm12, %v1068_v30, -inf }
0x11a6   :  { %1073 = vmax.xlane.f32.xlu0 %v1072_v32 }
0x1233   :  { %v1074_v33 = vpop.xlane.xlu0 %1073 }
0x1234   :  { %v1075_v34 = vsub.f32 %v1068_v30, %v1074_v33 }
0x1236   :  { %v1076_v35 = vmul.f32 1.442695, %v1075_v34 }
0x1238   :  { %1295 = vpow2.f32 %v1076_v35 }
0x1242   :  { %v1296_v11 = vpop.eup %1295 }
0x1243   :  { %v1078_v36 = vsel %vm1071_vm12, %v1296_v11, 0.0 }
0x1244   :  { %1079 = vadd.xlane.f32.xlu1 %v1078_v36 }
0x12d1   :  { %v1080_v37 = vpop.xlane.xlu1 %1079 }
0x12d2   :  { %1297 = vrcp.f32 %v1080_v37 }
0x12dc   :  { %v1298_v38 = vpop.eup %1297 }
0x12dd   :  { %v1082_v39 = vmul.f32 %v1298_v38, %v1296_v11 }
0x12df   :  { %1083 = vst.msk [vmem:[#allocation2] sm:$0x1] %vm1071_vm12, %v1082_v39 }
0x12e0   :  { %1310 = shalt.err (!%p1307_p4)
}
0x12e1   :  { %s1311_s15 = scalar_lea.hbm %s1577_s10, 16 }
0x12e2   :  { %p1312_p5 = scmp.ne.s32.totalorder %s1577_s10, %s1311_s15  ;;  %p1315_p6 = scmp.lt.u32.totalorder %s1311_s15, %s1577_s10 }
0x12e4   :  { %p1317_p7 = pnand %p1315_p6, %p1312_p5 }
0x12e6   :  { %1320 = shalt.err (!%p1317_p7)
}
0x12e7   :  { %1093 = dma.vmem_to_hbm [thread:$0]  %s1091_s11, 16, %s1577_s10, [#allocation3]  }
0x12e8   :  { %1321 = dma.done.wait [#allocation3], 16  }
0x12e9   :  { %1322 = vsyncadd [#allocation3], 4294967280 }
0x12ea   :  { %1097 = vsyncpa [#allocation3], 1 }

</bundles_post_ra>
